<compile_context>
chip_gen: v7x
topology: tpu7x:2x2x1
jax: 0.10.0
libtpu: 0.0.40
codegen_flags: <defaults>
</compile_context>

<pallas_src>
import jax
import jax.numpy as jnp
from jax.experimental import pallas as pl
from jax.experimental.pallas import tpu as pltpu

BN_EPS = 1e-5          # nn.BatchNorm2d default eps
SAFE_LOG_EPS = 1e-6    # braindecode safe_log eps
NEG_BIG = -1e30        # bias for padded classifier lanes


# ----------------------------- Pallas kernel --------------------------------
def _eegye_kernel(x_ref, w1_ref, b1_ref, pool_ref, w2_ref, b2_ref,
                  w3_ref, b3_ref, out_ref):
    x = x_ref[...]                                            # (TB, T*C)

    # conv_time ∘ conv_spat ∘ BatchNorm(eval) — all linear, folded into W1 / b1.
    h = jnp.dot(x, w1_ref[...], preferred_element_type=jnp.float32) + b1_ref[...]
    h = h * h                                                 # conv_nonlin = square

    # AvgPool2d((P_len,1),(P_str,1)) over time as one matmul with a precomputed
    # (T_OUT*F_s, T_POOL*F_s) block matrix (identity over the filter axis).
    h = jnp.dot(h, pool_ref[...], preferred_element_type=jnp.float32)
    h = jnp.log(jnp.maximum(h, SAFE_LOG_EPS))                 # pool_nonlin = safe_log
    # Dropout is identity in eval.

    # feature_reduction: Conv2d(F_s, R, (T_POOL, 1)) == dense over flattened (p, g).
    h = jnp.dot(h, w2_ref[...], preferred_element_type=jnp.float32) + b2_ref[...]

    # classifier: Conv2d(R, n_classes, (1, 1)) == dense (lanes padded to 128),
    # then LogSoftmax over lanes.
    logits = jnp.dot(h, w3_ref[...], preferred_element_type=jnp.float32) + b3_ref[...]
    m = jnp.max(logits, axis=-1, keepdims=True)
    z = logits - m
    lse = jnp.log(jnp.sum(jnp.exp(z), axis=-1, keepdims=True))
    out_ref[...] = z - lse                                    # (TB, 128) lane-dense store


# ------------------------ one-time parameter folding -------------------------
def prepare_params(params, cfg):
    C = cfg["in_chans"]
    T = cfg["input_time_length"]
    F_s = cfg["n_filters_spat"]
    K = cfg["filter_time_length"]
    R = cfg["reductionsize"]
    n_classes = cfg["n_classes"]
    P_len, P_str = cfg["pool_time_length"], cfg["pool_time_stride"]
    T_out = T - K + 1
    T_pool = (T_out - P_len) // P_str + 1
    n_pad = 128 * ((n_classes + 127) // 128)

    bn_scale = (1.0 + BN_EPS) ** -0.5                          # eval-mode BN, fresh stats

    wt = params["w_time"][:, 0, :, 0]                          # (F_t, K)
    ws = params["w_spat"][:, :, 0, :]                          # (F_s, F_t, C)
    weff = jnp.einsum("gfc,fk->kcg", ws, wt) * bn_scale        # (K, C, F_s), BN folded
    beff = jnp.einsum("gfc,f->g", ws, params["b_time"]) * bn_scale   # (F_s,)

    # Toeplitz fold of the K-tap temporal conv:
    #   W1[(t_in, c), (t, g)] = weff[t_in - t, c, g] if 0 <= t_in - t < K else 0
    t_in = jnp.arange(T)[:, None]
    t_out = jnp.arange(T_out)[None, :]
    kk = t_in - t_out                                          # (T, T_out)
    valid = (kk >= 0) & (kk < K)
    wgath = weff[jnp.clip(kk, 0, K - 1)]                       # (T, T_out, C, F_s)
    w1 = jnp.where(valid[:, :, None, None], wgath, 0.0)
    w1 = jnp.transpose(w1, (0, 2, 1, 3)).reshape(T * C, T_out * F_s)
    b1 = jnp.tile(beff[None, :], (T_out, 1)).reshape(1, T_out * F_s)

    # Pooling matrix expanded to the flattened (t, g) -> (p, g) feature layout.
    t_idx = jnp.arange(T_out)[None, :]
    p_idx = jnp.arange(T_pool)[:, None]
    pm = (((t_idx >= p_idx * P_str) & (t_idx < p_idx * P_str + P_len))
          .astype(jnp.float32) / P_len)                        # (T_pool, T_out)
    eye = jnp.eye(F_s, dtype=jnp.float32)
    pool_big = (pm.T[:, None, :, None] * eye[None, :, None, :]
                ).reshape(T_out * F_s, T_pool * F_s)

    # feature_reduction as dense: rows ordered (p, g) to match pool_big columns.
    w2 = jnp.transpose(params["w_red"][:, :, :, 0], (2, 1, 0)).reshape(T_pool * F_s, R)
    b2 = params["b_red"][None, :]                              # (1, R)

    # classifier, padded to 128 output lanes (padding bias -> -inf-like).
    wcls = params["w_cls"][:, :, 0, 0].T                       # (R, n_classes)
    w3 = jnp.zeros((R, n_pad), jnp.float32).at[:, :n_classes].set(wcls)
    b3 = jnp.full((1, n_pad), NEG_BIG, jnp.float32).at[0, :n_classes].set(params["b_cls"])

    return dict(w1=w1, b1=b1, pool=pool_big, w2=w2, b2=b2, w3=w3, b3=b3)


# ------------------------------ wrapper --------------------------------------
def eegye_forward(x_nchw, prepped, cfg):
    B, C, T, W = x_nchw.shape
    assert W == 1 and C == cfg["in_chans"] and T == cfg["input_time_length"]
    n_classes = cfg["n_classes"]
    n_pad = prepped["w3"].shape[1]
    TC = T * C

    # Batch blocking: TB samples per grid step (amortizes ~0.35us/step overhead and
    # fills the MXU M dimension).  Single grid step at small B.
    if B <= 256:
        TB = ((B + 7) // 8) * 8
        nb = 1
    else:
        TB = 256
        nb = (B + TB - 1) // TB
    B_pad = TB * nb

    # layout glue: NCHW (B, C, T, 1) -> (B, T*C) rows; row order (t, c) matches W1.
    x_flat = jnp.transpose(x_nchw[..., 0], (0, 2, 1)).reshape(B, TC)
    if B_pad > B:
        x_flat = jnp.pad(x_flat, ((0, B_pad - B), (0, 0)))

    out = pl.pallas_call(
        _eegye_kernel,
        out_shape=jax.ShapeDtypeStruct((B_pad, n_pad), jnp.float32),
        grid=(nb,),
        in_specs=[
            pl.BlockSpec((TB, TC), lambda b: (b, 0)),                    # x block
            pl.BlockSpec(prepped["w1"].shape, lambda b: (0, 0)),         # fused conv W
            pl.BlockSpec(prepped["b1"].shape, lambda b: (0, 0)),         # fused conv b
            pl.BlockSpec(prepped["pool"].shape, lambda b: (0, 0)),       # pooling matrix
            pl.BlockSpec(prepped["w2"].shape, lambda b: (0, 0)),         # feature_reduction W
            pl.BlockSpec(prepped["b2"].shape, lambda b: (0, 0)),         # feature_reduction b
            pl.BlockSpec(prepped["w3"].shape, lambda b: (0, 0)),         # classifier W (padded)
            pl.BlockSpec(prepped["b3"].shape, lambda b: (0, 0)),         # classifier b (padded)
        ],
        out_specs=pl.BlockSpec((TB, n_pad), lambda b: (b, 0)),
        compiler_params=pltpu.CompilerParams(
            dimension_semantics=("parallel",)),
    )(x_flat, prepped["w1"], prepped["b1"], prepped["pool"],
      prepped["w2"], prepped["b2"], prepped["w3"], prepped["b3"])
    return out[:B, :n_classes]                                 # (B, n_classes)


# ------------------------- deterministic init --------------------------------
def init_params(key, *, in_chans, n_classes, input_time_length,
                n_filters_time, n_filters_spat, filter_time_length,
                pool_time_length, pool_time_stride, reductionsize):
    def xavier(k, shape):  # PyTorch conv weight (out_c, in_c, kh, kw), gain=1
        fan_in = shape[1] * shape[2] * shape[3]
        fan_out = shape[0] * shape[2] * shape[3]
        bound = (6.0 / (fan_in + fan_out)) ** 0.5
        return jax.random.uniform(k, shape, jnp.float32, -bound, bound)

    t_out = input_time_length - filter_time_length + 1
    t_pool = (t_out - pool_time_length) // pool_time_stride + 1
    ks = jax.random.split(key, 4)
    return dict(
        w_time=xavier(ks[0], (n_filters_time, 1, filter_time_length, 1)),
        b_time=jnp.zeros((n_filters_time,), jnp.float32),
        w_spat=xavier(ks[1], (n_filters_spat, n_filters_time, 1, in_chans)),
        w_red=xavier(ks[2], (reductionsize, n_filters_spat, t_pool, 1)),
        b_red=jnp.zeros((reductionsize,), jnp.float32),
        w_cls=xavier(ks[3], (n_classes, reductionsize, 1, 1)),
        b_cls=jnp.zeros((n_classes,), jnp.float32),
    )


# -------------------------- pure-JAX reference -------------------------------
def eegye_reference(x_nchw, params, cfg):
    B, C, T, _ = x_nchw.shape
    K = cfg["filter_time_length"]
    P_len, P_str = cfg["pool_time_length"], cfg["pool_time_stride"]
    T_out = T - K + 1
    x = jnp.transpose(x_nchw, (0, 3, 2, 1))                 # (B, 1, T, C)
    wt = params["w_time"][:, 0, :, 0]
    h = jnp.stack([x[:, 0, k:k + T_out, :] for k in range(K)], axis=1)
    h = jnp.einsum("fk,bktc->bftc", wt, h) + params["b_time"][None, :, None, None]
    ws = params["w_spat"][:, :, 0, :]
    g = jnp.einsum("gfc,bftc->bgt", ws, h)                  # conv_spat (no bias)
    g = g / jnp.sqrt(1.0 + BN_EPS)                          # batchnorm (eval)
    g = g * g                                               # square
    T_pool = (T_out - P_len) // P_str + 1
    pooled = jnp.stack([g[:, :, p * P_str:p * P_str + P_len].mean(-1)
                        for p in range(T_pool)], axis=-1)
    pooled = jnp.log(jnp.maximum(pooled, SAFE_LOG_EPS))     # safe_log
    wr = params["w_red"][:, :, :, 0]
    feat = jnp.einsum("rgp,bgp->br", wr, pooled) + params["b_red"][None, :]
    wc = params["w_cls"][:, :, 0, 0]
    logits = feat @ wc.T + params["b_cls"][None, :]
    return jax.nn.log_softmax(logits, axis=-1)


# --------------------------------- main ---------------------------------------
if __name__ == "__main__":
    cfg = dict(in_chans=4, n_classes=4, input_time_length=32,
               n_filters_time=8, n_filters_spat=8, filter_time_length=5,
               pool_time_length=8, pool_time_stride=4, reductionsize=16)
    key = jax.random.PRNGKey(0)
    pkey, xkey = jax.random.split(key)
    params = init_params(pkey, **cfg)
    x = jax.random.normal(
        xkey, (2, cfg["in_chans"], cfg["input_time_length"], 1), jnp.float32)

    prepped = prepare_params(params, cfg)          # one-time weight folding (hoisted)
    forward = jax.jit(lambda xx: eegye_forward(xx, prepped, cfg))

    y = jax.block_until_ready(forward(x))

    y_ref = eegye_reference(x, params, cfg)
    assert y.shape == (2, cfg["n_classes"]), y.shape
    assert jnp.allclose(y, y_ref, rtol=1e-3, atol=1e-4), (y, y_ref)
    print("KERNEL_OK")
</pallas_src>

<mosaic_0001>
module attributes {stable_mosaic.version = 11 : i64} {
  func.func @_eegye_kernel(%arg0: i32, %arg1: memref<8x128xf32, #tpu.memory_space<vmem>>, %arg2: memref<128x224xf32, #tpu.memory_space<vmem>>, %arg3: memref<1x224xf32, #tpu.memory_space<vmem>>, %arg4: memref<224x48xf32, #tpu.memory_space<vmem>>, %arg5: memref<48x16xf32, #tpu.memory_space<vmem>>, %arg6: memref<1x16xf32, #tpu.memory_space<vmem>>, %arg7: memref<16x128xf32, #tpu.memory_space<vmem>>, %arg8: memref<1x128xf32, #tpu.memory_space<vmem>>, %arg9: memref<8x128xf32, #tpu.memory_space<vmem>>) attributes {dimension_semantics = [#tpu.dimension_semantics<parallel>], iteration_bounds = array<i64: 1>, scalar_prefetch = 0 : i64, scratch_operands = 0 : i64, tpu.core_type = #tpu.core_type<tc>, window_params = [{transform_indices = @transform_0, window_bounds = array<i64: 8, 128>}, {pipeline_mode = #tpu.pipeline_mode<synchronous>, transform_indices = @transform_1, window_bounds = array<i64: 128, 224>}, {pipeline_mode = #tpu.pipeline_mode<synchronous>, transform_indices = @transform_2, window_bounds = array<i64: 1, 224>}, {pipeline_mode = #tpu.pipeline_mode<synchronous>, transform_indices = @transform_3, window_bounds = array<i64: 224, 48>}, {pipeline_mode = #tpu.pipeline_mode<synchronous>, transform_indices = @transform_4, window_bounds = array<i64: 48, 16>}, {pipeline_mode = #tpu.pipeline_mode<synchronous>, transform_indices = @transform_5, window_bounds = array<i64: 1, 16>}, {pipeline_mode = #tpu.pipeline_mode<synchronous>, transform_indices = @transform_6, window_bounds = array<i64: 16, 128>}, {pipeline_mode = #tpu.pipeline_mode<synchronous>, transform_indices = @transform_7, window_bounds = array<i64: 1, 128>}, {transform_indices = @transform_8, window_bounds = array<i64: 8, 128>}]} {
    %c0 = arith.constant 0 : index
    %c0_0 = arith.constant 0 : index
    %0 = vector.load %arg1[%c0, %c0_0] : memref<8x128xf32, #tpu.memory_space<vmem>>, vector<8x128xf32>
    %c0_1 = arith.constant 0 : index
    %c0_2 = arith.constant 0 : index
    %1 = vector.load %arg2[%c0_1, %c0_2] : memref<128x224xf32, #tpu.memory_space<vmem>>, vector<128x224xf32>
    %cst = arith.constant dense<0.000000e+00> : vector<8x224xf32>
    %2 = tpu.matmul %0, %1, %cst {dimension_numbers = #tpu.dot_dimension_numbers<[1], [0], [0], [1], [0, 0, 1, 1], [], []>} : vector<8x128xf32>, vector<128x224xf32>, vector<8x224xf32> -> vector<8x224xf32>
    %c0_3 = arith.constant 0 : index
    %c0_4 = arith.constant 0 : index
    %3 = vector.load %arg3[%c0_3, %c0_4] : memref<1x224xf32, #tpu.memory_space<vmem>>, vector<1x224xf32>
    %4 = vector.broadcast %3 : vector<1x224xf32> to vector<8x224xf32>
    %5 = arith.addf %2, %4 : vector<8x224xf32>
    %6 = arith.mulf %5, %5 : vector<8x224xf32>
    %c0_5 = arith.constant 0 : index
    %c0_6 = arith.constant 0 : index
    %7 = vector.load %arg4[%c0_5, %c0_6] : memref<224x48xf32, #tpu.memory_space<vmem>>, vector<224x48xf32>
    %cst_7 = arith.constant dense<0.000000e+00> : vector<8x48xf32>
    %8 = tpu.matmul %6, %7, %cst_7 {dimension_numbers = #tpu.dot_dimension_numbers<[1], [0], [0], [1], [0, 0, 1, 1], [], []>} : vector<8x224xf32>, vector<224x48xf32>, vector<8x48xf32> -> vector<8x48xf32>
    %cst_8 = arith.constant 9.99999997E-7 : f32
    %9 = vector.broadcast %cst_8 : f32 to vector<8x48xf32>
    %10 = arith.maximumf %8, %9 : vector<8x48xf32>
    %11 = math.log %10 : vector<8x48xf32>
    %c0_9 = arith.constant 0 : index
    %c0_10 = arith.constant 0 : index
    %12 = vector.load %arg5[%c0_9, %c0_10] : memref<48x16xf32, #tpu.memory_space<vmem>>, vector<48x16xf32>
    %cst_11 = arith.constant dense<0.000000e+00> : vector<8x16xf32>
    %13 = tpu.matmul %11, %12, %cst_11 {dimension_numbers = #tpu.dot_dimension_numbers<[1], [0], [0], [1], [0, 0, 1, 1], [], []>} : vector<8x48xf32>, vector<48x16xf32>, vector<8x16xf32> -> vector<8x16xf32>
    %c0_12 = arith.constant 0 : index
    %c0_13 = arith.constant 0 : index
    %14 = vector.load %arg6[%c0_12, %c0_13] : memref<1x16xf32, #tpu.memory_space<vmem>>, vector<1x16xf32>
    %15 = vector.broadcast %14 : vector<1x16xf32> to vector<8x16xf32>
    %16 = arith.addf %13, %15 : vector<8x16xf32>
    %c0_14 = arith.constant 0 : index
    %c0_15 = arith.constant 0 : index
    %17 = vector.load %arg7[%c0_14, %c0_15] : memref<16x128xf32, #tpu.memory_space<vmem>>, vector<16x128xf32>
    %cst_16 = arith.constant dense<0.000000e+00> : vector<8x128xf32>
    %18 = tpu.matmul %16, %17, %cst_16 {dimension_numbers = #tpu.dot_dimension_numbers<[1], [0], [0], [1], [0, 0, 1, 1], [], []>} : vector<8x16xf32>, vector<16x128xf32>, vector<8x128xf32> -> vector<8x128xf32>
    %c0_17 = arith.constant 0 : index
    %c0_18 = arith.constant 0 : index
    %19 = vector.load %arg8[%c0_17, %c0_18] : memref<1x128xf32, #tpu.memory_space<vmem>>, vector<1x128xf32>
    %20 = vector.broadcast %19 : vector<1x128xf32> to vector<8x128xf32>
    %21 = arith.addf %18, %20 : vector<8x128xf32>
    %cst_19 = arith.constant dense<0xFF800000> : vector<8xf32>
    %22 = vector.multi_reduction <maximumf>, %21, %cst_19 [1] : vector<8x128xf32> to vector<8xf32>
    %23 = vector.shape_cast %22 : vector<8xf32> to vector<8x1xf32>
    %24 = vector.broadcast %23 : vector<8x1xf32> to vector<8x128xf32>
    %25 = arith.subf %21, %24 : vector<8x128xf32>
    %26 = math.exp %25 : vector<8x128xf32>
    %cst_20 = arith.constant dense<0.000000e+00> : vector<8xf32>
    %27 = vector.multi_reduction <add>, %26, %cst_20 [1] : vector<8x128xf32> to vector<8xf32>
    %28 = vector.shape_cast %27 : vector<8xf32> to vector<8x1xf32>
    %29 = math.log %28 : vector<8x1xf32>
    %30 = vector.broadcast %29 : vector<8x1xf32> to vector<8x128xf32>
    %31 = arith.subf %25, %30 : vector<8x128xf32>
    %c0_21 = arith.constant 0 : index
    %c0_22 = arith.constant 0 : index
    %32 = vector.load %arg9[%c0_21, %c0_22] : memref<8x128xf32, #tpu.memory_space<vmem>>, vector<8x128xf32>
    tpu.vector_store %arg9[%c0_21, %c0_22], %31 {strides = array<i32>} : memref<8x128xf32, #tpu.memory_space<vmem>>, vector<8x128xf32>,
    return
  }
  func.func @transform_0(%arg0: i32) -> (i32, i32) {
    %c0_i32 = arith.constant 0 : i32
    %c0_i32_0 = arith.constant 0 : i32
    return %arg0, %c0_i32 : i32, i32
  }
  func.func @transform_1(%arg0: i32) -> (i32, i32) {
    %c0_i32 = arith.constant 0 : i32
    %c0_i32_0 = arith.constant 0 : i32
    %c0_i32_1 = arith.constant 0 : i32
    return %c0_i32, %c0_i32_0 : i32, i32
  }
  func.func @transform_2(%arg0: i32) -> (i32, i32) {
    %c0_i32 = arith.constant 0 : i32
    %c0_i32_0 = arith.constant 0 : i32
    %c0_i32_1 = arith.constant 0 : i32
    return %c0_i32, %c0_i32_0 : i32, i32
  }
  func.func @transform_3(%arg0: i32) -> (i32, i32) {
    %c0_i32 = arith.constant 0 : i32
    %c0_i32_0 = arith.constant 0 : i32
    %c0_i32_1 = arith.constant 0 : i32
    return %c0_i32, %c0_i32_0 : i32, i32
  }
  func.func @transform_4(%arg0: i32) -> (i32, i32) {
    %c0_i32 = arith.constant 0 : i32
    %c0_i32_0 = arith.constant 0 : i32
    %c0_i32_1 = arith.constant 0 : i32
    return %c0_i32, %c0_i32_0 : i32, i32
  }
  func.func @transform_5(%arg0: i32) -> (i32, i32) {
    %c0_i32 = arith.constant 0 : i32
    %c0_i32_0 = arith.constant 0 : i32
    %c0_i32_1 = arith.constant 0 : i32
    return %c0_i32, %c0_i32_0 : i32, i32
  }
  func.func @transform_6(%arg0: i32) -> (i32, i32) {
    %c0_i32 = arith.constant 0 : i32
    %c0_i32_0 = arith.constant 0 : i32
    %c0_i32_1 = arith.constant 0 : i32
    return %c0_i32, %c0_i32_0 : i32, i32
  }
  func.func @transform_7(%arg0: i32) -> (i32, i32) {
    %c0_i32 = arith.constant 0 : i32
    %c0_i32_0 = arith.constant 0 : i32
    %c0_i32_1 = arith.constant 0 : i32
    return %c0_i32, %c0_i32_0 : i32, i32
  }
  func.func @transform_8(%arg0: i32) -> (i32, i32) {
    %c0_i32 = arith.constant 0 : i32
    %c0_i32_0 = arith.constant 0 : i32
    return %arg0, %c0_i32 : i32, i32
  }
}

</mosaic_0001>

<bundles_post_ra>
// kernel: _lambda_.1
= control target key start
LH: loop header
LB: loop body
LE: loop exit
PB: predicated region body
PF: predicated region fallthrough
CT: control target
= control target key end

     0   :  { %13 = vsyncpa [#allocation3], 0  ;;  %s791_s0 = inlined_call_operand.vmem [shape: f32[8,128], index: 0, kind: input, shape index: {}]   ;;  %s792_s1 = inlined_call_operand.hbm [shape: f32[128,224], index: 1, kind: input, shape index: {}]   ;;  %s793_s2 = inlined_call_operand.vmem [shape: f32[1,224], index: 2, kind: input, shape index: {}]   ;;  %s794_s3 = inlined_call_operand.hbm [shape: f32[224,48], index: 3, kind: input, shape index: {}]   ;;  %s795_s4 = inlined_call_operand.vmem [shape: f32[48,16], index: 4, kind: input, shape index: {}]   ;;  %s796_s5 = inlined_call_operand.vmem [shape: f32[1,16], index: 5, kind: input, shape index: {}]   ;;  %s797_s6 = inlined_call_operand.vmem [shape: f32[16,128], index: 6, kind: input, shape index: {}]   ;;  %s798_s7 = inlined_call_operand.vmem [shape: f32[1,128], index: 7, kind: input, shape index: {}]   ;;  %s799_s8 = inlined_call_operand.vmem [shape: f32[8,128], index: 8, kind: output, shape index: {}]  }
   0x1   :  { %14 = vsyncpa [#allocation5], 0  ;;  %s653_s27 = smov [#allocation2]   ;;  %s605_s9 = scalar_lea.hbm %s792_s1, 4096 }
   0x2   :  { %s22_s28 = sshll.u32 %s653_s27, 4  ;;  %p606_p0 = scmp.ne.s32.totalorder %s792_s1, %s605_s9  ;;  %s23_s28 = int_to_ptr.vmem [resolvable:$true] %s22_s28 }
   0x3   :  { %p609_p1 = scmp.lt.u32.totalorder %s605_s9, %s792_s1 }
   0x5   :  { %p611_p2 = pnand %p609_p1, %p606_p0 }
   0x7   :  { %614 = shalt.err (!%p611_p2)
}
   0x8   :  { %s615_s14 = scalar_lea.vmem %s23_s28, 4096  ;;  %p620_p4 = scmp.lt.s32.totalorder %s23_s28, %s23_s28 }
   0x9   :  { %p616_p3 = scmp.ne.s32.totalorder %s23_s28, %s615_s14  ;;  %p621_p5 = scmp.lt.s32.totalorder %s615_s14, %s615_s14 }
   0xb   :  { %p622_p6 = por %p621_p5, %p620_p4 }
   0xd   :  { %p623_p7 = pnand %p622_p6, %p616_p3 }
   0xf   :  { %626 = shalt.err (!%p623_p7)
}
  0x10   :  { %s654_s15 = smov 256   ;;  %s655_s16 = smov 16  }
  0x11   :  { %28 = dma.hbm_to_vmem [thread:$0]  %s792_s1, 4096, %s23_s28, [#allocation3], %s654_s15, %s654_s15, %s655_s16  }
  0x12   :  { %s656_s19 = smov [#allocation4]   ;;  %s627_s23 = scalar_lea.hbm %s794_s3, 3584 }
  0x13   :  { %s36_s20 = sshll.u32 %s656_s19, 4  ;;  %p628_p8 = scmp.ne.s32.totalorder %s794_s3, %s627_s23  ;;  %s37_s20 = int_to_ptr.vmem [resolvable:$true] %s36_s20 }
  0x14   :  { %p631_p9 = scmp.lt.u32.totalorder %s627_s23, %s794_s3 }
  0x16   :  { %p633_p10 = pnand %p631_p9, %p628_p8 }
  0x18   :  { %636 = shalt.err (!%p633_p10)
}
  0x19   :  { %s637_s29 = scalar_lea.vmem %s37_s20, 3584  ;;  %p642_p12 = scmp.lt.s32.totalorder %s37_s20, %s37_s20 }
  0x1a   :  { %p638_p11 = scmp.ne.s32.totalorder %s37_s20, %s637_s29  ;;  %p643_p13 = scmp.lt.s32.totalorder %s637_s29, %s637_s29 }
  0x1c   :  { %p644_p0 = por %p643_p13, %p642_p12 }
  0x1e   :  { %p645_p1 = pnand %p644_p0, %p638_p11 }
  0x20   :  { %648 = shalt.err (!%p645_p1)
}
  0x21   :  { %s657_s1 = smov 128   ;;  %s658_s28 = smov 8  }
  0x22   :  { %42 = dma.hbm_to_vmem [thread:$0]  %s794_s3, 3584, %s37_s20, [#allocation5], %s657_s1, %s657_s1, %s658_s28  }
  0x23   :  { %649 = dma.done.wait [#allocation3], 4096  }
  0x24   :  { %650 = vsyncadd [#allocation3], 4294963200 }
  0x25   :  { %651 = dma.done.wait [#allocation5], 3584  }
  0x26   :  { %652 = vsyncadd [#allocation5], 4294963712  ;;  %v659_v0 = vmov 0.0   ;;  %v660_v1 = vmov 0.0|0.0   ;;  %v59_v2 = vld [vmem:[#allocation2 + $0x8] sm:$0xff]  ;;  %v61_v3 = vld [vmem:[#allocation2 + $0x18] sm:$0xff] }
  0x27   :  { %166 = vmatprep.mubr.f32.mxu0 %v659_v0  ;;  %536 = vmatprep.subr.bf16.mxu1 %v660_v1  ;;  %v58_v4 = vld [vmem:[#allocation2] sm:$0xff]  ;;  %v504_v5 = vpack.c.bf16 %v61_v3, %v59_v2  ;;  %v60_v6 = vld [vmem:[#allocation2 + $0x10] sm:$0xff]  ;;  %v63_v7 = vld [vmem:[#allocation2 + $0x28] sm:$0xff]  ;;  %vm203_vm0 = vcmask 785408   ;;  %vm661_vm1 = vmmov 0   ;;  %vm293_vm2 = vcmask 392192  }
  0x28   :  { %v65_v8 = vld [vmem:[#allocation2 + $0x38] sm:$0xff]  ;;  %v506_v9 = vpack.c.bf16 %v60_v6, %v58_v4  ;;  %v62_v11 = vld [vmem:[#allocation2 + $0x20] sm:$0xff]  ;;  %v64_v12 = vld [vmem:[#allocation2 + $0x30] sm:$0xff]  ;;  %vm376_vm3 = vcmask 130048  }
  0x29   :  { %v508_v10 = vpack.c.bf16 %v65_v8, %v63_v7  ;;  %v67_v13 = vld [vmem:[#allocation2 + $0x48] sm:$0xff]  ;;  %505 = vmatprep.subr.bf16.mxu0 %v504_v5  ;;  %v69_v14 = vld [vmem:[#allocation2 + $0x58] sm:$0xff]  ;;  %v510_v15 = vpack.c.bf16 %v64_v12, %v62_v11  ;;  %v66_v17 = vld [vmem:[#allocation2 + $0x40] sm:$0xff] }
  0x2a   :  { %507 = vmatpush1.bf16.msra.mxu0 %v506_v9  ;;  %v512_v16 = vpack.c.bf16 %v69_v14, %v67_v13  ;;  %v68_v18 = vld [vmem:[#allocation2 + $0x50] sm:$0xff]  ;;  %v71_v19 = vld [vmem:[#allocation2 + $0x68] sm:$0xff]  ;;  %v73_v20 = vld [vmem:[#allocation2 + $0x78] sm:$0xff] }
  0x2b   :  { %509 = vmatprep.subr.bf16.mxu0 %v508_v10  ;;  %v514_v21 = vpack.c.bf16 %v68_v18, %v66_v17  ;;  %v516_v22 = vpack.c.bf16 %v73_v20, %v71_v19  ;;  %v70_v23 = vld [vmem:[#allocation2 + $0x60] sm:$0xff]  ;;  %v72_v24 = vld [vmem:[#allocation2 + $0x70] sm:$0xff]  ;;  %v75_v25 = vld [vmem:[#allocation2 + $0x88] sm:$0xff] }
  0x2c   :  { %v77_v26 = vld [vmem:[#allocation2 + $0x98] sm:$0xff]  ;;  %v175_v27 = vld [vmem:[#allocation4] sm:$0xff]  ;;  %v176_v28 = vld [vmem:[#allocation4 + $0x8] sm:$0xff]  ;;  %v518_v30 = vpack.c.bf16 %v72_v24, %v70_v23 }
  0x2d   :  { %v177_v29 = vld [vmem:[#allocation4 + $0x10] sm:$0xff]  ;;  %v537_v31 = vpack.c.bf16 %v176_v28, %v175_v27  ;;  %v178_v32 = vld [vmem:[#allocation4 + $0x18] sm:$0xff]  ;;  %v520_v33 = vpack.c.bf16 %v77_v26, %v75_v25  ;;  %v74_v34 = vld [vmem:[#allocation2 + $0x80] sm:$0xff] }
  0x2e   :  { %511 = vmatpush1.bf16.msra.mxu0 %v510_v15  ;;  %v76_v35 = vld [vmem:[#allocation2 + $0x90] sm:$0xff]  ;;  %v79_v36 = vld [vmem:[#allocation2 + $0xa8] sm:$0xff]  ;;  %v81_v37 = vld [vmem:[#allocation2 + $0xb8] sm:$0xff]  ;;  %v540_v38 = vpack.c.bf16 %v178_v32, %v177_v29 }
  0x2f   :  { %513 = vmatprep.subr.bf16.mxu0 %v512_v16  ;;  %538 = vmatpush1.bf16.msra.mxu1 %v537_v31  ;;  %v179_v39 = vld [vmem:[#allocation4 + $0x20] sm:$0xff]  ;;  %v180_v40 = vld [vmem:[#allocation4 + $0x28] sm:$0xff]  ;;  %v522_v41 = vpack.c.bf16 %v76_v35, %v74_v34  ;;  %v524_v42 = vpack.c.bf16 %v81_v37, %v79_v36  ;;  %v80_v44 = vld [vmem:[#allocation2 + $0xb0] sm:$0xff]  ;;  %v92_v31 = vlaneseq }
  0x30   :  { %539 = vmatprep.subr.bf16.mxu1 %v660_v1  ;;  %v78_v43 = vld [vmem:[#allocation2 + $0xa0] sm:$0xff]  ;;  %v83_v45 = vld [vmem:[#allocation2 + $0xc8] sm:$0xff]  ;;  %v85_v46 = vld [vmem:[#allocation2 + $0xd8] sm:$0xff]  ;;  %v543_v47 = vpack.c.bf16 %v180_v40, %v179_v39 }
  0x31   :  { %v181_v48 = vld [vmem:[#allocation4 + $0x30] sm:$0xff]  ;;  %v182_v49 = vld [vmem:[#allocation4 + $0x38] sm:$0xff]  ;;  %v526_v50 = vpack.c.bf16 %v80_v44, %v78_v43  ;;  %v528_v51 = vpack.c.bf16 %v85_v46, %v83_v45  ;;  %v82_v52 = vld [vmem:[#allocation2 + $0xc0] sm:$0xff]  ;;  %v93_v32 = vshrl.u32 %v92_v31, 7 }
  0x32   :  { %515 = vmatpush1.bf16.msra.mxu0 %v514_v21  ;;  %v84_v53 = vld [vmem:[#allocation2 + $0xd0] sm:$0xff]  ;;  %v87_v54 = vld [vmem:[#allocation2 + $0xe8] sm:$0xff]  ;;  %v89_v55 = vld [vmem:[#allocation2 + $0xf8] sm:$0xff]  ;;  %v546_v56 = vpack.c.bf16 %v182_v49, %v181_v48 }
  0x33   :  { %517 = vmatprep.subr.bf16.mxu0 %v516_v22  ;;  %541 = vmatpush1.bf16.msra.mxu1 %v540_v38  ;;  %v183_v57 = vld [vmem:[#allocation4 + $0x40] sm:$0xff]  ;;  %v184_v58 = vld [vmem:[#allocation4 + $0x48] sm:$0xff]  ;;  %v530_v59 = vpack.c.bf16 %v84_v53, %v82_v52  ;;  %v532_v60 = vpack.c.bf16 %v89_v55, %v87_v54  ;;  %v88_v62 = vld [vmem:[#allocation2 + $0xf0] sm:$0xff]  ;;  %v98_v35 = vsub.s32 1, %v93_v32 }
  0x34   :  { %542 = vmatprep.subr.bf16.mxu1 %v660_v1  ;;  %v86_v61 = vld [vmem:[#allocation2 + $0xe0] sm:$0xff]  ;;  %v549_v63 = vpack.c.bf16 %v184_v58, %v183_v57  ;;  %v185_v2 = vld [vmem:[#allocation4 + $0x50] sm:$0xff]  ;;  %v186_v3 = vld [vmem:[#allocation4 + $0x58] sm:$0xff] }
  0x35   :  { %v534_v4 = vpack.c.bf16 %v88_v62, %v86_v61  ;;  %v552_v5 = vpack.c.bf16 %v186_v3, %v185_v2  ;;  %v187_v6 = vld [vmem:[#allocation4 + $0x60] sm:$0xff]  ;;  %v188_v7 = vld [vmem:[#allocation4 + $0x68] sm:$0xff]  ;;  %v189_v10 = vld [vmem:[#allocation4 + $0x70] sm:$0xff] }
  0x36   :  { %519 = vmatpush1.bf16.msra.mxu0 %v518_v30  ;;  %v57_v8 = vld [vmem:[%s791_s0] sm:$0xff]  ;;  %v555_v9 = vpack.c.bf16 %v188_v7, %v187_v6  ;;  %v190_v11 = vld [vmem:[#allocation4 + $0x78] sm:$0xff]  ;;  %v192_v14 = vld [vmem:[#allocation4 + $0x88] sm:$0xff] }
  0x37   :  { %521 = vmatprep.subr.bf16.mxu0 %v520_v33  ;;  %544 = vmatpush1.bf16.msra.mxu1 %v543_v47  ;;  %v558_v12 = vpack.c.bf16 %v190_v11, %v189_v10  ;;  %v191_v13 = vld [vmem:[#allocation4 + $0x80] sm:$0xff]  ;;  %v193_v16 = vld [vmem:[#allocation4 + $0x90] sm:$0xff]  ;;  %v194_v17 = vld [vmem:[#allocation4 + $0x98] sm:$0xff]  ;;  %v94_v33 = vsub.s32 0, %v93_v32 }
  0x38   :  { %545 = vmatprep.subr.bf16.mxu1 %v660_v1  ;;  %v561_v15 = vpack.c.bf16 %v192_v14, %v191_v13  ;;  %v564_v18 = vpack.c.bf16 %v194_v17, %v193_v16  ;;  %v195_v19 = vld [vmem:[#allocation4 + $0xa0] sm:$0xff]  ;;  %v196_v20 = vld [vmem:[#allocation4 + $0xa8] sm:$0xff]  ;;  %v197_v22 = vld [vmem:[#allocation4 + $0xb0] sm:$0xff] }
  0x39   :  { %v567_v21 = vpack.c.bf16 %v196_v20, %v195_v19  ;;  %v198_v23 = vld [vmem:[#allocation4 + $0xb8] sm:$0xff]  ;;  %v199_v25 = vld [vmem:[#allocation4 + $0xc0] sm:$0xff]  ;;  %v200_v26 = vld [vmem:[#allocation4 + $0xc8] sm:$0xff] }
  0x3a   :  { %523 = vmatpush1.bf16.msra.mxu0 %v522_v41  ;;  %v570_v24 = vpack.c.bf16 %v198_v23, %v197_v22  ;;  %v573_v27 = vpack.c.bf16 %v200_v26, %v199_v25  ;;  %v201_v28 = vld [vmem:[#allocation4 + $0xd0] sm:$0xff]  ;;  %v202_v29 = vld [vmem:[#allocation4 + $0xd8] sm:$0xff]  ;;  %v90_v34 = vld [vmem:[%s793_s2] sm:$0x3] }
  0x3b   :  { %525 = vmatprep.subr.bf16.mxu0 %v524_v42  ;;  %547 = vmatpush1.bf16.msra.mxu1 %v546_v56  ;;  %v576_v30 = vpack.c.bf16 %v202_v29, %v201_v28  ;;  %v95_v36 = vrot.slane %v90_v34, %v94_v33  ;;  %v99_v37 = vrot.slane %v90_v34, %v98_v35  ;;  %v280_v44 = vld [vmem:[%s795_s4] sm:$0xff]  ;;  %v281_v45 = vld [vmem:[%s795_s4 + $0x8] sm:$0xff]  ;;  %v282_v47 = vld [vmem:[%s795_s4 + $0x10] sm:$0xff] }
  0x3c   :  { %548 = vmatprep.subr.bf16.mxu1 %v660_v1  ;;  %v579_v46 = vpack.c.bf16 %v281_v45, %v280_v44  ;;  %v283_v48 = vld [vmem:[%s795_s4 + $0x18] sm:$0xff]  ;;  %v367_v56 = vld [vmem:[%s797_s6] sm:$0xff]  ;;  %v368_v57 = vld [vmem:[%s797_s6 + $0x8] sm:$0xff] }
  0x3d   :  { %v582_v49 = vpack.c.bf16 %v283_v48, %v282_v47  ;;  %v470_v2 = vld [vmem:[%s798_s7] ss:$0 sm:$0xff] }
  0x3e   :  { %527 = vmatpush1.bf16.msra.mxu0 %v526_v50  ;;  %v284_v50 = vld [vmem:[%s795_s4 + $0x20] sm:$0xff] }
  0x3f   :  { %529 = vmatprep.subr.bf16.mxu0 %v528_v51  ;;  %550 = vmatpush1.bf16.msra.mxu1 %v549_v63  ;;  %v285_v51 = vld [vmem:[%s795_s4 + $0x28] sm:$0xff] }
  0x40   :  { %551 = vmatprep.subr.bf16.mxu1 %v660_v1  ;;  %v585_v52 = vpack.c.bf16 %v285_v51, %v284_v50 }
  0x42   :  { %531 = vmatpush1.bf16.msra.mxu0 %v530_v59  ;;  %v588_v59 = vpack.c.bf16 %v368_v57, %v367_v56 }
  0x43   :  { %533 = vmatprep.subr.bf16.mxu0 %v532_v60  ;;  %553 = vmatpush1.bf16.msra.mxu1 %v552_v5 }
  0x44   :  { %554 = vmatprep.subr.bf16.mxu1 %v660_v1 }
  0x46   :  { %535 = vmatpush1.bf16.msra.mxu0 %v534_v4 }
  0x47   :  { %578 = vmatprep.subr.bf16.mxu0 %v660_v1  ;;  %556 = vmatpush1.bf16.msra.mxu1 %v555_v9 }
  0x48   :  { %557 = vmatprep.subr.bf16.mxu1 %v660_v1 }
  0x49   :  { %167 = vmatmul.mubr.f32.vlgmr.msra.gmra.mrb[0].mxu0 %v57_v8 }
  0x4a   :  { %580 = vmatpush3.bf16.msra.mxu0 %v579_v46  ;;  %494 = vmatprep.mubr.msk.f32.mxu0 %vm661_vm1, %v659_v0 }
  0x4b   :  { %559 = vmatpush1.bf16.msra.mxu1 %v558_v12  ;;  %581 = vmatprep.subr.bf16.mxu0 %v660_v1 }
  0x4c   :  { %560 = vmatprep.subr.bf16.mxu1 %v660_v1 }
  0x4e   :  { %583 = vmatpush3.bf16.msra.mxu0 %v582_v49 }
  0x4f   :  { %562 = vmatpush1.bf16.msra.mxu1 %v561_v15  ;;  %584 = vmatprep.subr.bf16.mxu0 %v660_v1 }
  0x50   :  { %563 = vmatprep.subr.bf16.mxu1 %v660_v1 }
  0x52   :  { %586 = vmatpush3.bf16.msra.mxu0 %v585_v52 }
  0x53   :  { %565 = vmatpush1.bf16.msra.mxu1 %v564_v18  ;;  %587 = vmatprep.subr.bf16.mxu0 %v660_v1 }
  0x54   :  { %566 = vmatprep.subr.bf16.mxu1 %v660_v1 }
  0x57   :  { %568 = vmatpush1.bf16.msra.mxu1 %v567_v21 }
  0x58   :  { %569 = vmatprep.subr.bf16.mxu1 %v660_v1 }
  0x5b   :  { %571 = vmatpush1.bf16.msra.mxu1 %v570_v24 }
  0x5c   :  { %572 = vmatprep.subr.bf16.mxu1 %v660_v1 }
  0x5f   :  { %574 = vmatpush1.bf16.msra.mxu1 %v573_v27 }
  0x60   :  { %575 = vmatprep.subr.bf16.mxu1 %v660_v1  ;;  %v468_v1 = vld [vmem:[%s796_s5] ss:$0 sm:$0xff] }
  0x63   :  { %577 = vmatpush1.bf16.msra.mxu1 %v576_v30 }
 0x11c   :  { %v168_v38 = vpop.f32.mrb[0].mxu0 }
 0x11d   :  { %v169_v39 = vadd.f32 %v168_v38, %v95_v36  ;;  %v170_v40 = vpop.f32.mrb[1].mxu0 }
 0x11e   :  { %v171_v41 = vadd.f32 %v170_v40, %v99_v37 }
 0x11f   :  { %v173_v43 = vmul.f32 %v169_v39, %v169_v39 }
 0x120   :  { %v174_v42 = vmul.f32 %v171_v41, %v171_v41 }
 0x122   :  { %467 = vmatprep.mubr.msk.f32.mxu1 %vm203_vm0, %v174_v42 }
 0x123   :  { %272 = vmatmul.mubr.f32.vlgmr.msra.gmra.mrb[0].mxu1 %v173_v43 }
 0x1f6   :  { %v273_v53 = vpop.f32.mrb[0].mxu1 }
 0x1f7   :  { %v277_v54 = vmax.f32 %v273_v53, 1e-06  ;;  %v275_v55 = vpop.f32.mrb[1].mxu1 }
 0x1f9   :  { %599 = vlog2.f32 %v277_v54 }
 0x203   :  { %v600_v58 = vpop.eup %599 }
 0x204   :  { %v279_v60 = vmul.f32 0.6931472, %v600_v58 }
 0x206   :  { %495 = vmatmul.mubr.msk.f32.vlgmr.msra.gmra.mrb[2].mxu0 %vm293_vm2, %v279_v60 }
 0x207   :  { %589 = vmatpush3.bf16.msra.mxu0 %v588_v59  ;;  %501 = vmatprep.mubr.msk.f32.mxu0 %vm661_vm1, %v659_v0 }
 0x2d9   :  { %v363_v61 = vpop.f32.mrb[2].mxu0 }
 0x2da   :  { %v364_v62 = vadd.f32 %v468_v1, %v363_v61  ;;  %v496_v63 = vpop.f32.mrb[3].mxu0 }
 0x2dc   :  { %502 = vmatmul.mubr.msk.f32.vlgmr.msra.gmra.mrb[4].mxu0 %vm376_vm3, %v364_v62 }
 0x3af   :  { %v446_v3 = vpop.f32.mrb[4].mxu0 }
 0x3b0   :  { %v447_v4 = vadd.f32 %v470_v2, %v446_v3  ;;  %v503_v5 = vpop.f32.mrb[5].mxu0 }
 0x3b2   :  { %450 = vmax.xlane.f32.xlu0 %v447_v4 }
 0x43f   :  { %v451_v6 = vpop.xlane.xlu0 %450 }
 0x440   :  { %v452_v7 = vsub.f32 %v447_v4, %v451_v6 }
 0x442   :  { %v453_v0 = vmul.f32 1.442695, %v452_v7 }
 0x444   :  { %601 = vpow2.f32 %v453_v0 }
 0x44e   :  { %v602_v8 = vpop.eup %601 }
 0x44f   :  { %455 = vadd.xlane.f32.xlu0 %v602_v8 }
 0x4dc   :  { %v456_v9 = vpop.xlane.xlu0 %455 }
 0x4dd   :  { %603 = vlog2.f32 %v456_v9 }
 0x4e7   :  { %v604_v10 = vpop.eup %603 }
 0x4e8   :  { %v458_v11 = vmul.f32 0.6931472, %v604_v10 }
 0x4ea   :  { %v459_v12 = vsub.f32 %v452_v7, %v458_v11 }
 0x4ec   :  { %460 = vst [vmem:[%s799_s8] sm:$0xff] %v459_v12 }
 0x4ed   :  { %465 = vsyncpa [#allocation3], 1 }
 0x4ee   :  { %466 = vsyncpa [#allocation5], 1 }

</bundles_post_ra>
